<compile_context>
chip_gen: v5e
topology: v5e:2x2
jax: 0.10.0
libtpu: 0.0.40
codegen_flags: <defaults>
</compile_context>

<pallas_src>
import functools

import jax
import jax.numpy as jnp
import numpy as np
from jax.experimental import pallas as pl
from jax.experimental.pallas import tpu as pltpu


# ----------------------------------------------------------------------------
# helpers
# ----------------------------------------------------------------------------
def _pick_row_tile(n: int, pref: int = 512, min_steps: int = 2) -> int:
    """Largest multiple-of-8 tile <= pref that divides n, preferring a grid of
    at least `min_steps` steps (so v7x's two TensorCores both get work and the
    DMA/compute pipeline has depth)."""
    for t in (512, 384, 256, 128, 64, 32, 16, 8):
        if t <= pref and n % t == 0 and n // t >= min_steps:
            return t
    for t in (512, 384, 256, 128, 64, 32, 16, 8):
        if t <= pref and n % t == 0:
            return t
    return n


def _cls_columns(last_hidden, *, min_row_bytes: int = 512):
    """Return a 2-D array whose column block [0:H] is the CLS token.

    For lane-aligned H with reasonably wide rows this is a zero-copy reshape
    [N, S, H] -> [N, S*H]; the kernel BlockSpec then only DMAs columns [0:H]
    (the CLS token), i.e. N*H elements instead of N*S*H.  For tiny rows
    (< min_row_bytes) or non-lane-aligned H, a dense XLA CLS slice is cheaper
    than a descriptor-dominated strided DMA.
    """
    N, S, H = last_hidden.shape
    if S == 1:
        return last_hidden.reshape(N, H)
    row_bytes = H * jnp.dtype(last_hidden.dtype).itemsize
    if H % 128 == 0 and row_bytes >= min_row_bytes:
        return last_hidden.reshape(N, S * H)      # zero-copy; CLS = column block 0
    return last_hidden[:, 0, :]                   # dense CLS slice


# ----------------------------------------------------------------------------
# Kernel 1: CLS pooling + MLPLayer (Linear + Tanh)
# ----------------------------------------------------------------------------
def cls_mlp_kernel(cls_ref, wt_ref, b_ref, out_ref):
    # cls_ref: [tile_N, H] (bf16 CLS rows)   wt_ref: [H, H] pre-transposed W (bf16)
    # b_ref:   [1, H] f32 bias
    y = jnp.dot(cls_ref[...], wt_ref[...], preferred_element_type=jnp.float32)
    out_ref[...] = jnp.tanh(y + b_ref[...]).astype(out_ref.dtype)   # f32 epilogue


def cls_mlp(last_hidden, W, b, *, out_dtype=jnp.bfloat16):
    """CLS pooling + MLPLayer.  last_hidden [N,S,H], W [H,H], b [H] -> [N,H]."""
    N, S, H = last_hidden.shape
    cls2d = _cls_columns(last_hidden)                       # CLS-only DMA source
    wt = jnp.asarray(W, jnp.bfloat16).T                     # one hoisted transpose; no
    b2 = jnp.asarray(b, jnp.float32).reshape(1, H)          # per-step in-kernel transpose
    tile_n = _pick_row_tile(N)
    grid = (N // tile_n,)
    return pl.pallas_call(
        cls_mlp_kernel,
        out_shape=jax.ShapeDtypeStruct((N, H), out_dtype),
        grid_spec=pl.GridSpec(
            grid=grid,
            in_specs=[
                pl.BlockSpec((tile_n, H), lambda i: (i, 0)),   # col block 0 = CLS
                pl.BlockSpec((H, H), lambda i: (0, 0)),        # resident weight
                pl.BlockSpec((1, H), lambda i: (0, 0)),        # resident bias
            ],
            out_specs=pl.BlockSpec((tile_n, H), lambda i: (i, 0)),
        ),
        compiler_params=pltpu.CompilerParams(
            dimension_semantics=("parallel",)),   # megacore row split + pipelining
    )(cls2d, wt, b2)


# ----------------------------------------------------------------------------
# Kernel 2 (train path): row-tiled cosine similarity + FlatNCE loss
# ----------------------------------------------------------------------------
def flatnce_loss_kernel(s1_ref, s2_ref, out_ref, *, inv_temp):
    # s1_ref: [tile_B, H] query embeddings (bf16, this grid step's rows)
    # s2_ref: [B, H]      key embeddings   (bf16, resident across the grid)
    tile_b = s1_ref.shape[0]
    row0 = pl.multiple_of(pl.program_id(0) * tile_b, tile_b)
    eps = 1e-8

    s1 = s1_ref[...].astype(jnp.float32)
    s2 = s2_ref[...].astype(jnp.float32)
    s1n = s1 * jax.lax.rsqrt(jnp.sum(s1 * s1, axis=-1, keepdims=True) + eps)
    s2n = s2 * jax.lax.rsqrt(jnp.sum(s2 * s2, axis=-1, keepdims=True) + eps)

    # positives: row-wise elementwise dot with the aligned key rows, in f32
    # (no [B,B] select / cross-lane reduce, no bf16 quantization on the diag).
    s2d = s2_ref[pl.ds(row0, tile_b), :].astype(jnp.float32)
    s2dn = s2d * jax.lax.rsqrt(jnp.sum(s2d * s2d, axis=-1, keepdims=True) + eps)
    positive = jnp.sum(s1n * s2dn, axis=-1, keepdims=True) * inv_temp    # [tile_B, 1]

    # cosine rows: bf16 MXU operands, f32 accumulation, 1/temp applied after.
    cos = jax.lax.dot_general(
        s1n.astype(jnp.bfloat16), s2n.astype(jnp.bfloat16),
        dimension_numbers=(((1,), (1,)), ((), ())),
        preferred_element_type=jnp.float32) * inv_temp                   # [tile_B, B]

    # diagonal mask with a single full-size iota (plus a [tile_B,1] row index)
    col = jax.lax.broadcasted_iota(jnp.int32, cos.shape, 1)
    row = row0 + jax.lax.broadcasted_iota(jnp.int32, (tile_b, 1), 0)
    neg = jnp.where(col == row, -jnp.inf, cos)
    m = jnp.max(neg, axis=-1, keepdims=True)
    lse = jnp.log(jnp.sum(jnp.exp(neg - m), axis=-1, keepdims=True)) + m

    out_ref[...] = lse - positive                                        # [tile_B, 1]


def flatnce_train_loss(last_hidden, W, b, temp, *, batch, num_sent):
    """CLS pooling + MLP (kernel 1) then row-tiled FlatNCE loss (kernel 2)."""
    N, S, H = last_hidden.shape
    assert N == batch * num_sent and num_sent >= 2
    if batch < 2:
        raise ValueError("FlatNCE loss needs batch >= 2 (off-diagonal negatives).")

    # Stage 1: pooling + MLP for all B*num_sent rows (tiled, parallel, bf16).
    emb = cls_mlp(last_hidden, W, b, out_dtype=jnp.bfloat16)      # [N, H] bf16

    # Stage 2: pick sentence-0 / sentence-1 rows as lane-aligned column blocks
    # of the zero-copy [B, num_sent*H] view when possible (no strided slices).
    if H % 128 == 0:
        emb2d = emb.reshape(batch, num_sent * H)
        s1_arr = s2_arr = emb2d
        s1_col, s2_col = 0, 1
    else:
        e = emb.reshape(batch, num_sent, H)
        s1_arr, s2_arr = e[:, 0, :], e[:, 1, :]
        s1_col = s2_col = 0

    tile_b = _pick_row_tile(batch, pref=256)     # bounds VMEM to ~tile_B x B
    grid = (batch // tile_b,)
    kernel = functools.partial(flatnce_loss_kernel, inv_temp=float(1.0 / temp))
    per_row = pl.pallas_call(
        kernel,
        out_shape=jax.ShapeDtypeStruct((batch, 1), jnp.float32),
        grid_spec=pl.GridSpec(
            grid=grid,
            in_specs=[
                pl.BlockSpec((tile_b, H), lambda i, c=s1_col: (i, c)),   # query tile
                pl.BlockSpec((batch, H), lambda i, c=s2_col: (0, c)),    # resident keys
            ],
            out_specs=pl.BlockSpec((tile_b, 1), lambda i: (i, 0)),
        ),
        compiler_params=pltpu.CompilerParams(
            dimension_semantics=("parallel",)),
    )(s1_arr, s2_arr)
    return jnp.mean(per_row)


# ----------------------------------------------------------------------------
# SimCse forward (pooler_type='cls')
# ----------------------------------------------------------------------------
def simcse_forward(last_hidden, attention_mask, W, b, temp, *, batch, num_sent,
                   train=False, out_dtype=jnp.bfloat16):
    # attention_mask is unused by the 'cls' pooler (kept for signature fidelity).
    del attention_mask
    if train:
        return flatnce_train_loss(last_hidden, W, b, temp,
                                  batch=batch, num_sent=num_sent)
    emb = cls_mlp(last_hidden, W, b, out_dtype=out_dtype)    # [B*num_sent, H]
    sent_embed_out = emb.reshape(batch, num_sent, emb.shape[-1])
    return jnp.squeeze(sent_embed_out, axis=1) if num_sent == 1 else sent_embed_out


# ----------------------------------------------------------------------------
# pure-JAX reference (f32) for a sanity check
# ----------------------------------------------------------------------------
def _reference_forward(last_hidden, W, b, temp, batch, num_sent, train):
    cls = last_hidden[:, 0, :]
    emb = jnp.tanh(cls @ W.T + b)
    e = emb.reshape(batch, num_sent, -1)
    if not train:
        return jnp.squeeze(e, axis=1) if num_sent == 1 else e
    s1, s2 = e[:, 0, :], e[:, 1, :]
    n1 = jnp.linalg.norm(s1, axis=-1, keepdims=True)
    n2 = jnp.linalg.norm(s2, axis=-1, keepdims=True)
    cos = (s1 @ s2.T) / jnp.maximum(n1 * n2.T, 1e-8) / temp
    pos = jnp.diagonal(cos)
    neg = jnp.where(jnp.eye(batch, dtype=bool), -jnp.inf, cos)
    return jnp.mean(jax.scipy.special.logsumexp(neg, axis=1) - pos)


if __name__ == "__main__":
    B, num_sent, S, H = 8, 2, 8, 128      # H lane-aligned (real BERT H=768 also is)
    N = B * num_sent
    temp = 0.05

    key = jax.random.PRNGKey(0)
    k_hid, k_w, k_b = jax.random.split(key, 3)

    # Synthetic stand-in for BERT's last_hidden_state (a TPU BERT emits bf16)
    # and the attention mask.
    last_hidden = jax.random.normal(k_hid, (N, S, H),
                                    dtype=jnp.float32).astype(jnp.bfloat16)
    attention_mask = jnp.ones((N, S), dtype=jnp.float32)

    # MLPLayer parameters (nn.Linear(hidden, hidden): weight [out,in], bias).
    W = jax.random.normal(k_w, (H, H), dtype=jnp.float32) * 0.05
    b = jax.random.normal(k_b, (H,), dtype=jnp.float32) * 0.01

    loss = simcse_forward(last_hidden, attention_mask, W, b, temp,
                          batch=B, num_sent=num_sent, train=True)
    loss = jax.block_until_ready(loss)

    emb = simcse_forward(last_hidden, attention_mask, W, b, temp,
                         batch=B, num_sent=num_sent, train=False)
    emb = jax.block_until_ready(emb)

    # Sanity check vs. pure-JAX f32 reference (bf16 MXU/IO -> loose tolerances).
    lh_f32 = last_hidden.astype(jnp.float32)
    loss_ref = _reference_forward(lh_f32, W, b, temp, B, num_sent, True)
    emb_ref = _reference_forward(lh_f32, W, b, temp, B, num_sent, False)
    emb_f32 = np.asarray(emb.astype(jnp.float32))
    assert np.isfinite(float(loss)), "loss is not finite"
    assert np.allclose(emb_f32, np.asarray(emb_ref), atol=5e-2), \
        "embedding mismatch vs reference"
    assert abs(float(loss) - float(loss_ref)) < 3e-1, "loss mismatch vs reference"

    print("KERNEL_OK")
</pallas_src>

<mosaic_0001>
module attributes {stable_mosaic.version = 11 : i64} {
  func.func @cls_mlp_kernel(%arg0: i32, %arg1: memref<8x128xbf16, #tpu.memory_space<vmem>>, %arg2: memref<128x128xbf16, #tpu.memory_space<vmem>>, %arg3: memref<1x128xf32, #tpu.memory_space<vmem>>, %arg4: memref<8x128xbf16, #tpu.memory_space<vmem>>) attributes {dimension_semantics = [#tpu.dimension_semantics<parallel>], iteration_bounds = array<i64: 2>, scalar_prefetch = 0 : i64, scratch_operands = 0 : i64, tpu.core_type = #tpu.core_type<tc>, window_params = [{transform_indices = @transform_0, window_bounds = array<i64: 8, 128>}, {pipeline_mode = #tpu.pipeline_mode<synchronous>, transform_indices = @transform_1, window_bounds = array<i64: 128, 128>}, {pipeline_mode = #tpu.pipeline_mode<synchronous>, transform_indices = @transform_2, window_bounds = array<i64: 1, 128>}, {transform_indices = @transform_3, window_bounds = array<i64: 8, 128>}]} {
    %c0 = arith.constant 0 : index
    %c0_0 = arith.constant 0 : index
    %0 = vector.load %arg1[%c0, %c0_0] : memref<8x128xbf16, #tpu.memory_space<vmem>>, vector<8x128xbf16>
    %c0_1 = arith.constant 0 : index
    %c0_2 = arith.constant 0 : index
    %1 = vector.load %arg2[%c0_1, %c0_2] : memref<128x128xbf16, #tpu.memory_space<vmem>>, vector<128x128xbf16>
    %cst = arith.constant dense<0.000000e+00> : vector<8x128xf32>
    %2 = tpu.matmul %0, %1, %cst {dimension_numbers = #tpu.dot_dimension_numbers<[1], [0], [0], [1], [0, 0, 1, 1], [], []>} : vector<8x128xbf16>, vector<128x128xbf16>, vector<8x128xf32> -> vector<8x128xf32>
    %c0_3 = arith.constant 0 : index
    %c0_4 = arith.constant 0 : index
    %3 = vector.load %arg3[%c0_3, %c0_4] : memref<1x128xf32, #tpu.memory_space<vmem>>, vector<1x128xf32>
    %4 = vector.broadcast %3 : vector<1x128xf32> to vector<8x128xf32>
    %5 = arith.addf %2, %4 : vector<8x128xf32>
    %6 = math.tanh %5 : vector<8x128xf32>
    %7 = arith.truncf %6 : vector<8x128xf32> to vector<8x128xbf16>
    %c0_5 = arith.constant 0 : index
    %c0_6 = arith.constant 0 : index
    %8 = vector.load %arg4[%c0_5, %c0_6] : memref<8x128xbf16, #tpu.memory_space<vmem>>, vector<8x128xbf16>
    tpu.vector_store %arg4[%c0_5, %c0_6], %7 {strides = array<i32>} : memref<8x128xbf16, #tpu.memory_space<vmem>>, vector<8x128xbf16>,
    return
  }
  func.func @transform_0(%arg0: i32) -> (i32, i32) {
    %c0_i32 = arith.constant 0 : i32
    %c0_i32_0 = arith.constant 0 : i32
    return %arg0, %c0_i32 : i32, i32
  }
  func.func @transform_1(%arg0: i32) -> (i32, i32) {
    %c0_i32 = arith.constant 0 : i32
    %c0_i32_0 = arith.constant 0 : i32
    %c0_i32_1 = arith.constant 0 : i32
    return %c0_i32, %c0_i32_0 : i32, i32
  }
  func.func @transform_2(%arg0: i32) -> (i32, i32) {
    %c0_i32 = arith.constant 0 : i32
    %c0_i32_0 = arith.constant 0 : i32
    %c0_i32_1 = arith.constant 0 : i32
    return %c0_i32, %c0_i32_0 : i32, i32
  }
  func.func @transform_3(%arg0: i32) -> (i32, i32) {
    %c0_i32 = arith.constant 0 : i32
    %c0_i32_0 = arith.constant 0 : i32
    return %arg0, %c0_i32 : i32, i32
  }
}

</mosaic_0001>

<bundles_post_ra>
// kernel: tpu_custom_call.1
= control target key start
LH: loop header
LB: loop body
LE: loop exit
PB: predicated region body
PF: predicated region fallthrough
CT: control target
= control target key end

     0   :  { %8 = vsyncpa [#allocation3], 0  ;;  %s800_s0 = inlined_call_operand.hbm [shape: bf16[16,128], index: 0, kind: input, shape index: {}]   ;;  %s801_s1 = inlined_call_operand.hbm [shape: bf16[128,128], index: 1, kind: input, shape index: {}]   ;;  %s802_s2 = inlined_call_operand.vmem [shape: f32[1,128], index: 2, kind: input, shape index: {}]   ;;  %s803_s3 = inlined_call_operand.hbm [shape: bf16[16,128], index: 3, kind: output, shape index: {}]  }
   0x1   :  { %10 = vsyncpa [#allocation3 + $0x1], 0 }
   0x2   :  { %11 = vsyncpa [#allocation6], 0 }
   0x3   :  { %12 = vsyncpa [#allocation4], 0 }
   0x4   :  { %14 = vsyncpa [#allocation4 + $0x1], 0  ;;  %s657_s12 = smov 0   ;;  %s659_s13 = smov 0  }
   0x5   :  { %s661_s14 = smov 0   ;;  %s663_s15 = smov 0  }
   0x6 LB: > { %s130_s18 = sshll.u32 %s801_s1, 4  ;;  %s681_s19 = sadd.s32 4294967295, %s632_s15   ;;  %s632_s15 = sphi %s663_s15, %s813_s15   ;;  %s628_s14 = sphi %s661_s14, %s812_s14   ;;  %s624_s13 = sphi %s659_s13, %s811_s13   ;;  %s620_s12 = sphi %s657_s12, %s810_s12   ;;  %s131_s18 = int_to_ptr.hbm [resolvable:$true] %s130_s18 }
   0x7   : > { %p387_p0 = scmp.ge.s32.totalorder %s632_s15, 1  ;;  %p41_p1 = scmp.eq.s32.totalorder %s681_s19, 0 }
   0x8   : > { %p119_p2 = scmp.lt.s32.totalorder %s632_s15, 3  ;;  %s634_s21 = smov [#allocation5]  }
   0x9   : > { %s132_s22 = sshll.u32 %s634_s21, 4  ;;  %s635_s23 = smov 64   ;;  %s133_s22 = int_to_ptr.vmem [resolvable:$true] %s132_s22 }
   0xa   : > { %p686_p3 = pnand %p387_p0, %p119_p2  ;;  %s636_s24 = smov 4  }
   0xb   : > { %s386_s25 = sadd.s32 4294967294, %s632_s15   ;;  %s697_s26 = sadd.s32 1, %s632_s15  }
   0xc   : > { %p448_p4 = pneg %p686_p3  ;;  %s27_s27 = sadd.s32 1, %s628_s14 }
   0xd   : > { %s24_s28 = ssub.s32 %s632_s15, %s697_s26  ;;  %p34_p7 = scmp.ne.s32.totalorder %s628_s14, %s624_s13 }
   0xe   : > { %p449_p6 = pnand %p448_p4, %p41_p1  ;;  %p25_p8 = scmp.eq.s32.totalorder %s24_s28, 0 }
   0xf   : > { %p35_p9 = scmp.eq.s32.totalorder %s632_s15, 0  ;;  %p40_p10 = scmp.ne.s32.totalorder %s624_s13, %s620_s12 }
  0x10   : > { %451 = dma.hbm_to_vmem [thread:$0]  (!%p449_p6), %s131_s18, 1024, %s133_s22, [#allocation6], %s635_s23, %s635_s23, %s636_s24  }
  0x11   : > { %p106_p11 = scmp.eq.s32.totalorder %s681_s19, 1  ;;  %p713_p12 = por %p41_p1, %p40_p10 }
  0x12   : > { %s709_s29 = scalar_select %p25_p8, %s628_s14, %s27_s27  }
  0x13   : > { %p717_p13 = por %p106_p11, %p34_p7  ;;  %p112_p0 = scmp.eq.s32.totalorder %s386_s25, 1 }
  0x14   : > { %p36_p2 = por %p35_p9, %p34_p7  ;;  %s149_s5 = sand.u32 1, %s628_s14  }
  0x15   : > { %p722_p4 = por %p112_p0, %p40_p10  ;;  %p461_p6 = scmp.lt.s32.totalorder %s632_s15, 2 }
  0x16   : > { %s390_s7 = sshll.u32 %s149_s5, 2  ;;  %s391_s8 = sshll.u32 %s632_s15, 2 }
  0x17   : > { %s157_s11 = scalar_lea.hbm %s800_s0, %s391_s8  ;;  %s153_s17 = scalar_lea.vmem [#allocation2], %s390_s7 }
  0x18   : > { %s159_s16 = sshll.u32 %s157_s11, 4  ;;  %s161_s18 = sshll.u32 %s153_s17, 4  ;;  %s160_s16 = int_to_ptr.hbm [resolvable:$true] %s159_s16  ;;  %s162_s18 = int_to_ptr.vmem [resolvable:$true] %s161_s18 }
  0x19   : > { %p731_p8 = pnand %p461_p6, %p36_p2  ;;  %s150_s22 = scalar_lea.sflag [#allocation3], %s149_s5 }
  0x1a   : > { %s532_s23 = sshra.s32 %s160_s16, 4  ;;  %s539_s28 = scalar_lea.hbm %s800_s0, 8  ;;  %s533_s23 = int_to_ptr.hbm [resolvable:$true] %s532_s23 }
  0x1b   : > { %s534_s24 = scalar_lea.hbm %s533_s23, 4  ;;  %p536_p9 = pneg %p731_p8 }
  0x1c   : > { %p535_p7 = scmp.ne.s32.totalorder %s533_s23, %s534_s24  ;;  %p540_p0 = scmp.lt.s32.totalorder %s533_s23, %s800_s0 }
  0x1d   : > { %p541_p2 = scmp.lt.s32.totalorder %s539_s28, %s534_s24 }
  0x1e   : > { %p537_p10 = pnand %p536_p9, %p535_p7 }
  0x1f   : > { %p542_p6 = por %p541_p2, %p540_p0 }
  0x20   : > { %p538_p11 = pneg %p537_p10 }
  0x22   : > { %p543_p5 = pnand %p542_p6, %p538_p11 }
  0x24   : > { %546 = shalt.err (!%p543_p5)
}
  0x25   : > { %455 = dma.hbm_to_vmem [thread:$0]  (!%p731_p8), %s160_s16, 64, %s162_s18, %s150_s22  }
  0x26   : > { %170 = sbr.rel (%p686_p3) target bundleno = 218 (0xda), region = 32  ;;  %s748_s5 = sand.u32 (!%p686_p3), 1, %s624_s13  }
  0x27   : > { %s393_s9 = sshll.u32 (!%p686_p3), %s748_s5, 2  ;;  %s173_s10 = scalar_lea.sflag (!%p686_p3), [#allocation3], %s748_s5 }
  0x28   : > { %s176_s11 = scalar_lea.vmem (!%p686_p3), [#allocation2], %s393_s9 }
  0x2b   : > { %607 = dma.done.wait (%p713_p12), %s173_s10, 64  }
  0x2c   : > { %609 = vsyncadd (%p713_p12), %s173_s10, 4294967232 }
  0x2d   : > { %611 = dma.done.wait (%p41_p1), [#allocation6], 1024  }
  0x2e   : > { %613 = vsyncadd (%p41_p1), [#allocation6], 4294966272  ;;  %v439_v0 = vld [vmem:[#allocation5 + $0x38] sm:$0xff]  ;;  %v438_v1 = vld [vmem:[#allocation5 + $0x30] sm:$0xff]  ;;  %s429_s16 = sshll.u32 %s681_s19, 2  ;;  %s204_s22 = scalar_lea.vmem [#allocation7], %s393_s9 }
  0x2f   : > { %274 = vmatpush.bf16.msra.mxu0 %v439_v0  ;;  %v437_v2 = vld [vmem:[#allocation5 + $0x28] sm:$0xff]  ;;  %v436_v3 = vld [vmem:[#allocation5 + $0x20] sm:$0xff]  ;;  %v435_v4 = vld [vmem:[#allocation5 + $0x18] sm:$0xff]  ;;  %s301_s21 = scalar_lea.hbm %s803_s3, %s429_s16  ;;  %s303_s23 = sshll.u32 %s204_s22, 4  ;;  %s304_s23 = int_to_ptr.vmem [resolvable:$true] %s303_s23 }
  0x30   : > { %v434_v5 = vld [vmem:[#allocation5 + $0x10] sm:$0xff]  ;;  %v433_v6 = vld [vmem:[#allocation5 + $0x8] sm:$0xff]  ;;  %v432_v7 = vld [vmem:[#allocation5] sm:$0xff]  ;;  %s305_s24 = sshll.u32 %s301_s21, 4  ;;  %s291_s25 = scalar_lea.sflag [#allocation4], %s748_s5  ;;  %s306_s24 = int_to_ptr.hbm [resolvable:$true] %s305_s24 }
  0x31   : > { %v205_v8 = vld [vmem:[%s176_s11] sm:$0xf]  ;;  %s576_s27 = sshra.s32 %s306_s24, 4  ;;  %s582_s8 = scalar_lea.hbm %s803_s3, 8  ;;  %s577_s27 = int_to_ptr.hbm [resolvable:$true] %s576_s27 }
  0x32   : > { %v499_v9 = vld [vmem:[%s802_s2] ss:$0 sm:$0xff]  ;;  %s578_s19 = scalar_lea.hbm %s577_s27, 4  ;;  %p583_p12 = scmp.lt.s32.totalorder %s577_s27, %s803_s3 }
  0x33   : > { %275 = vmatpush.bf16.msra.mxu0 %v438_v1  ;;  %p579_p1 = scmp.ne.s32.totalorder %s577_s27, %s578_s19  ;;  %p584_p8 = scmp.lt.s32.totalorder %s582_s8, %s578_s19 }
  0x35   : > { %p580_p3 = pnand %p579_p1, %p717_p13  ;;  %p585_p7 = por %p584_p8, %p583_p12 }
  0x37   : > { %276 = vmatpush.bf16.msra.mxu0 %v437_v2  ;;  %p581_p5 = pneg %p580_p3 }
  0x39   : > { %p586_p9 = pnand %p585_p7, %p581_p5 }
  0x3b   : > { %277 = vmatpush.bf16.msra.mxu0 %v436_v3 }
  0x3f   : > { %278 = vmatpush.bf16.msra.mxu0 %v435_v4 }
  0x43   : > { %279 = vmatpush.bf16.msra.mxu0 %v434_v5 }
  0x47   : > { %280 = vmatpush.bf16.msra.mxu0 %v433_v6 }
  0x4b   : > { %281 = vmatpush.bf16.msra.mxu0 %v432_v7 }
  0x4e   : > { %282 = vmatmul.bf16.vlgmr.msra.gmra.mxu0 %v205_v8 }
  0xcb   : > { %v283_v10 = vpop.f32.mrf.mxu0 }
  0xcc   : > { %v284_v11 = vadd.f32 %v499_v9, %v283_v10 }
  0xce   : > { %500 = vtanh.f32 %v284_v11 }
  0xd3   : > { %v285_v12 = vpop.f32.mrf.mxu0 }
  0xd4   : > { %v501_v13 = vpop.eup %500 }
  0xd5   : > { %v288_v14 = vpack.c.bf16 %v501_v13, %v501_v13 }
  0xd7   : > { %289 = vst [vmem:[%s204_s22] sm:$0xf] %v288_v14 }
  0xd8   : > { %589 = shalt.err (!%p586_p9)
}
  0xd9   : > { %446 = dma.vmem_to_hbm [thread:$0]  (%p717_p13), %s304_s23, 64, %s306_s24, %s291_s25  }
  0xda PF: > { %s317_s5 = sand.u32 1, %s620_s12   ;;  %p809_p10 = scmp.ge.s32.totalorder %s632_s15, 2 }
  0xdb   : > { %s318_s11 = scalar_lea.sflag [#allocation4], %s317_s5 }
  0xdc   : > { %p457_p11 = pnand %p809_p10, %p722_p4 }
  0xde   : > { %p458_p0 = pneg %p457_p11 }
  0xe0   : > { %615 = dma.done.wait (%p458_p0), %s318_s11, 64  }
  0xe1   : > { %617 = vsyncadd (%p458_p0), %s318_s11, 4294967232  ;;  %p17_p2 = scmp.ge.s32.totalorder %s697_s26, 4   ;;  %s810_s12 = smov %s624_s13 }
  0xe2   : > { %s811_s13 = smov %s628_s14  ;;  %s812_s14 = smov %s709_s29 }
  0xe3   : > { %s813_s15 = smov %s697_s26  ;;  %19 = sbr.rel (!%p17_p2) target bundleno = 6 (0x6), region = 81 }
  0xe8   :  { %324 = vsyncpa [#allocation3], 1 }
  0xe9   :  { %326 = vsyncpa [#allocation3 + $0x1], 1 }
  0xea   :  { %327 = vsyncpa [#allocation6], 1 }
  0xeb   :  { %328 = vsyncpa [#allocation4], 1 }
  0xec   :  { %330 = vsyncpa [#allocation4 + $0x1], 1 }

</bundles_post_ra>
